<compile_context>
chip_gen: v7x
topology: tpu7x:2x2x1
jax: 0.10.0
libtpu: 0.0.40
codegen_flags: <defaults>
</compile_context>

<pallas_src>
import jax
import jax.numpy as jnp
from jax.experimental import pallas as pl
from jax.experimental.pallas import tpu as pltpu

H_DIM = 400
IN_DIM = 2
OUT_DIM = 2
OUT_PAD = 128          # lane-dense padded output width
DEFAULT_BLOCK_BATCH = 512


def _mlp_kernel(z_ref,
                w1_ref, b1_ref,
                w2_ref, b2_ref,
                w3_ref, b3_ref,
                w4_ref, b4_ref,
                o_ref):
    z = z_ref[...]                                   # (tb, 2) f32

    # ---- Layer 1 on the VPU: (tb,2)x(2,400). K=2 on the MXU would pad the
    # contraction to the MXU granule, so do two broadcast mul-adds instead.
    w1 = w1_ref[...].astype(jnp.float32)             # (2, 400)
    h = (z[:, 0:1] * w1[0:1, :]
         + z[:, 1:2] * w1[1:2, :]
         + b1_ref[...])
    h = jnp.maximum(h, 0.0)

    # ---- Layer 2: (tb,400)@(400,400), bf16 MXU, f32 accumulate.
    h = jnp.dot(h.astype(jnp.bfloat16), w2_ref[...],
                preferred_element_type=jnp.float32)
    h = jnp.maximum(h + b2_ref[...], 0.0)

    # ---- Layer 3
    h = jnp.dot(h.astype(jnp.bfloat16), w3_ref[...],
                preferred_element_type=jnp.float32)
    h = jnp.maximum(h + b3_ref[...], 0.0)

    # ---- Layer 4: output padded to 128 lanes for a dense (unmasked) store.
    out = jnp.dot(h.astype(jnp.bfloat16), w4_ref[...],
                  preferred_element_type=jnp.float32)
    o_ref[...] = (out + b4_ref[...]).astype(o_ref.dtype)


def generator_forward(z, params, *, block_batch=DEFAULT_BLOCK_BATCH):
    """z: (B, 2) float32.  params: dict with w1..w4 (in,out) f32 and b1..b4 (1,out) f32."""
    batch = z.shape[0]

    # --- prepare operands: bf16 weights, f32 biases, lane-padded layer 4.
    w1 = params["w1"].astype(jnp.bfloat16)                       # (2, 400)
    w2 = params["w2"].astype(jnp.bfloat16)                       # (400, 400)
    w3 = params["w3"].astype(jnp.bfloat16)                       # (400, 400)
    w4 = jnp.zeros((H_DIM, OUT_PAD), jnp.bfloat16).at[:, :OUT_DIM].set(
        params["w4"].astype(jnp.bfloat16))                       # (400, 128)
    b1 = params["b1"].astype(jnp.float32)                        # (1, 400)
    b2 = params["b2"].astype(jnp.float32)
    b3 = params["b3"].astype(jnp.float32)
    b4 = jnp.zeros((1, OUT_PAD), jnp.float32).at[:, :OUT_DIM].set(
        params["b4"].astype(jnp.float32))                        # (1, 128)

    # --- batch tiling: tb rows per grid step; pad batch up to a multiple.
    tb = min(block_batch, max(batch, 1))
    padded_batch = pl.cdiv(batch, tb) * tb
    if padded_batch != batch:
        z = jnp.pad(z, ((0, padded_batch - batch), (0, 0)))
    grid = (padded_batch // tb,)

    const_map = lambda i: (0, 0)
    in_specs = [
        pl.BlockSpec((tb, IN_DIM), lambda i: (i, 0)),            # z
        pl.BlockSpec((IN_DIM, H_DIM), const_map),                # w1 (resident)
        pl.BlockSpec((1, H_DIM), const_map),                     # b1
        pl.BlockSpec((H_DIM, H_DIM), const_map),                 # w2
        pl.BlockSpec((1, H_DIM), const_map),                     # b2
        pl.BlockSpec((H_DIM, H_DIM), const_map),                 # w3
        pl.BlockSpec((1, H_DIM), const_map),                     # b3
        pl.BlockSpec((H_DIM, OUT_PAD), const_map),               # w4 (padded)
        pl.BlockSpec((1, OUT_PAD), const_map),                   # b4 (padded)
    ]
    out_specs = pl.BlockSpec((tb, OUT_PAD), lambda i: (i, 0))

    flops = 2 * padded_batch * (IN_DIM * H_DIM + 2 * H_DIM * H_DIM
                                + H_DIM * OUT_PAD)
    weight_bytes = 2 * (IN_DIM * H_DIM + 2 * H_DIM * H_DIM + H_DIM * OUT_PAD)
    bias_bytes = 4 * (3 * H_DIM + OUT_PAD)
    io_bytes = 4 * padded_batch * (IN_DIM + OUT_PAD)
    cost = pl.CostEstimate(flops=flops, transcendentals=0,
                           bytes_accessed=weight_bytes + bias_bytes + io_bytes)

    out_padded = pl.pallas_call(
        _mlp_kernel,
        out_shape=jax.ShapeDtypeStruct((padded_batch, OUT_PAD), jnp.float32),
        grid=grid,
        in_specs=in_specs,
        out_specs=out_specs,
        compiler_params=pltpu.CompilerParams(
            dimension_semantics=("parallel",),      # shards batch over v7x's 2 TCs
            vmem_limit_bytes=32 * 1024 * 1024),     # sized for v7x's 64 MiB VMEM
        cost_estimate=cost,
    )(z, w1, b1, w2, b2, w3, b3, w4, b4)

    return out_padded[:batch, :OUT_DIM]


def init_params(key):
    """PyTorch-style uniform(-1/sqrt(fan_in), 1/sqrt(fan_in)) init, weights stored (in,out)."""
    dims = [(IN_DIM, H_DIM), (H_DIM, H_DIM), (H_DIM, H_DIM), (H_DIM, OUT_DIM)]
    params = {}
    for i, (fan_in, fan_out) in enumerate(dims, start=1):
        key, kw, kb = jax.random.split(key, 3)
        bound = 1.0 / jnp.sqrt(jnp.float32(fan_in))
        params[f"w{i}"] = jax.random.uniform(
            kw, (fan_in, fan_out), jnp.float32, minval=-bound, maxval=bound)
        params[f"b{i}"] = jax.random.uniform(
            kb, (1, fan_out), jnp.float32, minval=-bound, maxval=bound)
    return params


def _reference_forward(z, params):
    """Pure-JAX reference mirroring the kernel's mixed precision (bf16 weights,
    bf16 activations into the dots, f32 accumulation / elementwise)."""
    w1 = params["w1"].astype(jnp.bfloat16).astype(jnp.float32)
    w2 = params["w2"].astype(jnp.bfloat16)
    w3 = params["w3"].astype(jnp.bfloat16)
    w4 = params["w4"].astype(jnp.bfloat16)
    h = jnp.maximum(z @ w1 + params["b1"], 0.0)
    h = jnp.maximum(
        jnp.dot(h.astype(jnp.bfloat16), w2, preferred_element_type=jnp.float32)
        + params["b2"], 0.0)
    h = jnp.maximum(
        jnp.dot(h.astype(jnp.bfloat16), w3, preferred_element_type=jnp.float32)
        + params["b3"], 0.0)
    return (jnp.dot(h.astype(jnp.bfloat16), w4, preferred_element_type=jnp.float32)
            + params["b4"])


def _reference_forward_f32(z, params):
    h = jnp.maximum(z @ params["w1"] + params["b1"], 0.0)
    h = jnp.maximum(h @ params["w2"] + params["b2"], 0.0)
    h = jnp.maximum(h @ params["w3"] + params["b3"], 0.0)
    return h @ params["w4"] + params["b4"]


if __name__ == "__main__":
    key = jax.random.PRNGKey(0)
    key, kz = jax.random.split(key)
    batch = 8
    z = jax.random.normal(kz, (batch, IN_DIM), jnp.float32)

    params = init_params(key)

    out = generator_forward(z, params)
    out = jax.block_until_ready(out)
    assert out.shape == (batch, OUT_DIM), out.shape

    # Matching mixed-precision reference: tight tolerance.
    ref_bf16 = _reference_forward(z, params)
    assert jnp.allclose(out, ref_bf16, atol=2e-3, rtol=2e-3), \
        "mismatch vs bf16-weight JAX reference"

    # Full-f32 reference: loose tolerance (bf16 weight quantization error).
    ref_f32 = _reference_forward_f32(z, params)
    assert jnp.allclose(out, ref_f32, atol=5e-2, rtol=5e-2), \
        "mismatch vs f32 JAX reference"

    print("KERNEL_OK")
</pallas_src>

<mosaic_0001>
module attributes {stable_mosaic.version = 11 : i64} {
  func.func @_mlp_kernel(%arg0: i32, %arg1: memref<8x2xf32, #tpu.memory_space<vmem>>, %arg2: memref<2x400xbf16, #tpu.memory_space<vmem>>, %arg3: memref<1x400xf32, #tpu.memory_space<vmem>>, %arg4: memref<400x400xbf16, #tpu.memory_space<vmem>>, %arg5: memref<1x400xf32, #tpu.memory_space<vmem>>, %arg6: memref<400x400xbf16, #tpu.memory_space<vmem>>, %arg7: memref<1x400xf32, #tpu.memory_space<vmem>>, %arg8: memref<400x128xbf16, #tpu.memory_space<vmem>>, %arg9: memref<1x128xf32, #tpu.memory_space<vmem>>, %arg10: memref<8x128xf32, #tpu.memory_space<vmem>>) attributes {dimension_semantics = [#tpu.dimension_semantics<parallel>], iteration_bounds = array<i64: 1>, scalar_prefetch = 0 : i64, scratch_operands = 0 : i64, tpu.core_type = #tpu.core_type<tc>, window_params = [{transform_indices = @transform_0, window_bounds = array<i64: 8, 2>}, {pipeline_mode = #tpu.pipeline_mode<synchronous>, transform_indices = @transform_1, window_bounds = array<i64: 2, 400>}, {pipeline_mode = #tpu.pipeline_mode<synchronous>, transform_indices = @transform_2, window_bounds = array<i64: 1, 400>}, {pipeline_mode = #tpu.pipeline_mode<synchronous>, transform_indices = @transform_3, window_bounds = array<i64: 400, 400>}, {pipeline_mode = #tpu.pipeline_mode<synchronous>, transform_indices = @transform_4, window_bounds = array<i64: 1, 400>}, {pipeline_mode = #tpu.pipeline_mode<synchronous>, transform_indices = @transform_5, window_bounds = array<i64: 400, 400>}, {pipeline_mode = #tpu.pipeline_mode<synchronous>, transform_indices = @transform_6, window_bounds = array<i64: 1, 400>}, {pipeline_mode = #tpu.pipeline_mode<synchronous>, transform_indices = @transform_7, window_bounds = array<i64: 400, 128>}, {pipeline_mode = #tpu.pipeline_mode<synchronous>, transform_indices = @transform_8, window_bounds = array<i64: 1, 128>}, {transform_indices = @transform_9, window_bounds = array<i64: 8, 128>}]} {
    %c0 = arith.constant 0 : index
    %c0_0 = arith.constant 0 : index
    %0 = vector.load %arg1[%c0, %c0_0] : memref<8x2xf32, #tpu.memory_space<vmem>>, vector<8x2xf32>
    %c0_1 = arith.constant 0 : index
    %c0_2 = arith.constant 0 : index
    %1 = vector.load %arg2[%c0_1, %c0_2] : memref<2x400xbf16, #tpu.memory_space<vmem>>, vector<2x400xbf16>
    %2 = arith.extf %1 : vector<2x400xbf16> to vector<2x400xf32>
    %3 = vector.extract_strided_slice %0 {offsets = [0, 0], sizes = [8, 1], strides = [1, 1]} : vector<8x2xf32> to vector<8x1xf32>
    %4 = vector.extract_strided_slice %2 {offsets = [0, 0], sizes = [1, 400], strides = [1, 1]} : vector<2x400xf32> to vector<1x400xf32>
    %5 = vector.broadcast %3 : vector<8x1xf32> to vector<8x400xf32>
    %6 = vector.broadcast %4 : vector<1x400xf32> to vector<8x400xf32>
    %7 = arith.mulf %5, %6 : vector<8x400xf32>
    %8 = vector.extract_strided_slice %0 {offsets = [0, 1], sizes = [8, 1], strides = [1, 1]} : vector<8x2xf32> to vector<8x1xf32>
    %9 = vector.extract_strided_slice %2 {offsets = [1, 0], sizes = [1, 400], strides = [1, 1]} : vector<2x400xf32> to vector<1x400xf32>
    %10 = vector.broadcast %8 : vector<8x1xf32> to vector<8x400xf32>
    %11 = vector.broadcast %9 : vector<1x400xf32> to vector<8x400xf32>
    %12 = arith.mulf %10, %11 : vector<8x400xf32>
    %13 = arith.addf %7, %12 : vector<8x400xf32>
    %c0_3 = arith.constant 0 : index
    %c0_4 = arith.constant 0 : index
    %14 = vector.load %arg3[%c0_3, %c0_4] : memref<1x400xf32, #tpu.memory_space<vmem>>, vector<1x400xf32>
    %15 = vector.broadcast %14 : vector<1x400xf32> to vector<8x400xf32>
    %16 = arith.addf %13, %15 : vector<8x400xf32>
    %cst = arith.constant 0.000000e+00 : f32
    %17 = vector.broadcast %cst : f32 to vector<8x400xf32>
    %18 = arith.maximumf %16, %17 : vector<8x400xf32>
    %19 = arith.truncf %18 : vector<8x400xf32> to vector<8x400xbf16>
    %c0_5 = arith.constant 0 : index
    %c0_6 = arith.constant 0 : index
    %20 = vector.load %arg4[%c0_5, %c0_6] : memref<400x400xbf16, #tpu.memory_space<vmem>>, vector<400x400xbf16>
    %cst_7 = arith.constant dense<0.000000e+00> : vector<8x400xf32>
    %21 = tpu.matmul %19, %20, %cst_7 {dimension_numbers = #tpu.dot_dimension_numbers<[1], [0], [0], [1], [0, 0, 1, 1], [], []>} : vector<8x400xbf16>, vector<400x400xbf16>, vector<8x400xf32> -> vector<8x400xf32>
    %c0_8 = arith.constant 0 : index
    %c0_9 = arith.constant 0 : index
    %22 = vector.load %arg5[%c0_8, %c0_9] : memref<1x400xf32, #tpu.memory_space<vmem>>, vector<1x400xf32>
    %23 = vector.broadcast %22 : vector<1x400xf32> to vector<8x400xf32>
    %24 = arith.addf %21, %23 : vector<8x400xf32>
    %cst_10 = arith.constant 0.000000e+00 : f32
    %25 = vector.broadcast %cst_10 : f32 to vector<8x400xf32>
    %26 = arith.maximumf %24, %25 : vector<8x400xf32>
    %27 = arith.truncf %26 : vector<8x400xf32> to vector<8x400xbf16>
    %c0_11 = arith.constant 0 : index
    %c0_12 = arith.constant 0 : index
    %28 = vector.load %arg6[%c0_11, %c0_12] : memref<400x400xbf16, #tpu.memory_space<vmem>>, vector<400x400xbf16>
    %cst_13 = arith.constant dense<0.000000e+00> : vector<8x400xf32>
    %29 = tpu.matmul %27, %28, %cst_13 {dimension_numbers = #tpu.dot_dimension_numbers<[1], [0], [0], [1], [0, 0, 1, 1], [], []>} : vector<8x400xbf16>, vector<400x400xbf16>, vector<8x400xf32> -> vector<8x400xf32>
    %c0_14 = arith.constant 0 : index
    %c0_15 = arith.constant 0 : index
    %30 = vector.load %arg7[%c0_14, %c0_15] : memref<1x400xf32, #tpu.memory_space<vmem>>, vector<1x400xf32>
    %31 = vector.broadcast %30 : vector<1x400xf32> to vector<8x400xf32>
    %32 = arith.addf %29, %31 : vector<8x400xf32>
    %cst_16 = arith.constant 0.000000e+00 : f32
    %33 = vector.broadcast %cst_16 : f32 to vector<8x400xf32>
    %34 = arith.maximumf %32, %33 : vector<8x400xf32>
    %35 = arith.truncf %34 : vector<8x400xf32> to vector<8x400xbf16>
    %c0_17 = arith.constant 0 : index
    %c0_18 = arith.constant 0 : index
    %36 = vector.load %arg8[%c0_17, %c0_18] : memref<400x128xbf16, #tpu.memory_space<vmem>>, vector<400x128xbf16>
    %cst_19 = arith.constant dense<0.000000e+00> : vector<8x128xf32>
    %37 = tpu.matmul %35, %36, %cst_19 {dimension_numbers = #tpu.dot_dimension_numbers<[1], [0], [0], [1], [0, 0, 1, 1], [], []>} : vector<8x400xbf16>, vector<400x128xbf16>, vector<8x128xf32> -> vector<8x128xf32>
    %c0_20 = arith.constant 0 : index
    %c0_21 = arith.constant 0 : index
    %38 = vector.load %arg9[%c0_20, %c0_21] : memref<1x128xf32, #tpu.memory_space<vmem>>, vector<1x128xf32>
    %39 = vector.broadcast %38 : vector<1x128xf32> to vector<8x128xf32>
    %40 = arith.addf %37, %39 : vector<8x128xf32>
    %c0_22 = arith.constant 0 : index
    %c0_23 = arith.constant 0 : index
    %41 = vector.load %arg10[%c0_22, %c0_23] : memref<8x128xf32, #tpu.memory_space<vmem>>, vector<8x128xf32>
    tpu.vector_store %arg10[%c0_22, %c0_23], %40 {strides = array<i32>} : memref<8x128xf32, #tpu.memory_space<vmem>>, vector<8x128xf32>,
    return
  }
  func.func @transform_0(%arg0: i32) -> (i32, i32) {
    %c0_i32 = arith.constant 0 : i32
    %c0_i32_0 = arith.constant 0 : i32
    return %arg0, %c0_i32 : i32, i32
  }
  func.func @transform_1(%arg0: i32) -> (i32, i32) {
    %c0_i32 = arith.constant 0 : i32
    %c0_i32_0 = arith.constant 0 : i32
    %c0_i32_1 = arith.constant 0 : i32
    return %c0_i32, %c0_i32_0 : i32, i32
  }
  func.func @transform_2(%arg0: i32) -> (i32, i32) {
    %c0_i32 = arith.constant 0 : i32
    %c0_i32_0 = arith.constant 0 : i32
    %c0_i32_1 = arith.constant 0 : i32
    return %c0_i32, %c0_i32_0 : i32, i32
  }
  func.func @transform_3(%arg0: i32) -> (i32, i32) {
    %c0_i32 = arith.constant 0 : i32
    %c0_i32_0 = arith.constant 0 : i32
    %c0_i32_1 = arith.constant 0 : i32
    return %c0_i32, %c0_i32_0 : i32, i32
  }
  func.func @transform_4(%arg0: i32) -> (i32, i32) {
    %c0_i32 = arith.constant 0 : i32
    %c0_i32_0 = arith.constant 0 : i32
    %c0_i32_1 = arith.constant 0 : i32
    return %c0_i32, %c0_i32_0 : i32, i32
  }
  func.func @transform_5(%arg0: i32) -> (i32, i32) {
    %c0_i32 = arith.constant 0 : i32
    %c0_i32_0 = arith.constant 0 : i32
    %c0_i32_1 = arith.constant 0 : i32
    return %c0_i32, %c0_i32_0 : i32, i32
  }
  func.func @transform_6(%arg0: i32) -> (i32, i32) {
    %c0_i32 = arith.constant 0 : i32
    %c0_i32_0 = arith.constant 0 : i32
    %c0_i32_1 = arith.constant 0 : i32
    return %c0_i32, %c0_i32_0 : i32, i32
  }
  func.func @transform_7(%arg0: i32) -> (i32, i32) {
    %c0_i32 = arith.constant 0 : i32
    %c0_i32_0 = arith.constant 0 : i32
    %c0_i32_1 = arith.constant 0 : i32
    return %c0_i32, %c0_i32_0 : i32, i32
  }
  func.func @transform_8(%arg0: i32) -> (i32, i32) {
    %c0_i32 = arith.constant 0 : i32
    %c0_i32_0 = arith.constant 0 : i32
    %c0_i32_1 = arith.constant 0 : i32
    return %c0_i32, %c0_i32_0 : i32, i32
  }
  func.func @transform_9(%arg0: i32) -> (i32, i32) {
    %c0_i32 = arith.constant 0 : i32
    %c0_i32_0 = arith.constant 0 : i32
    return %arg0, %c0_i32 : i32, i32
  }
}

</mosaic_0001>

<bundles_post_ra>
// kernel: tpu_custom_call.1
= control target key start
LH: loop header
LB: loop body
LE: loop exit
PB: predicated region body
PF: predicated region fallthrough
CT: control target
= control target key end

     0   :  { %14 = vsyncpa [#allocation3], 0  ;;  %s3043_s0 = inlined_call_operand.vmem [shape: f32[8,2], index: 0, kind: input, shape index: {}]   ;;  %s3044_s1 = inlined_call_operand.vmem [shape: bf16[2,400], index: 1, kind: input, shape index: {}]   ;;  %s3045_s2 = inlined_call_operand.vmem [shape: f32[1,400], index: 2, kind: input, shape index: {}]   ;;  %s3046_s3 = inlined_call_operand.hbm [shape: bf16[400,400], index: 3, kind: input, shape index: {}]   ;;  %s3047_s4 = inlined_call_operand.vmem [shape: f32[1,400], index: 4, kind: input, shape index: {}]   ;;  %s3048_s5 = inlined_call_operand.hbm [shape: bf16[400,400], index: 5, kind: input, shape index: {}]   ;;  %s3049_s6 = inlined_call_operand.vmem [shape: f32[1,400], index: 6, kind: input, shape index: {}]   ;;  %s3050_s7 = inlined_call_operand.hbm [shape: bf16[400,128], index: 7, kind: input, shape index: {}]   ;;  %s3051_s8 = inlined_call_operand.vmem [shape: f32[1,128], index: 8, kind: input, shape index: {}]   ;;  %s3052_s9 = inlined_call_operand.hbm [shape: f32[8,128], index: 9, kind: output, shape index: {}]  }
   0x1   :  { %15 = vsyncpa [#allocation6], 0 }
   0x2   :  { %16 = vsyncpa [#allocation4], 0  ;;  %s2816_s30 = smov [#allocation5]   ;;  %s2817_s11 = smov [#allocation2]  }
   0x3   :  { %s42_s10 = sshll.u32 %s2816_s30, 4  ;;  %s28_s12 = sshll.u32 %s2817_s11, 4  ;;  %s43_s10 = int_to_ptr.vmem [resolvable:$true] %s42_s10  ;;  %s2876_s12 = int_to_ptr.vmem [resolvable:$true] %s28_s12 }
   0x4   :  { %s2722_s15 = scalar_lea.hbm %s3048_s5, 12800 }
   0x5   :  { %p2723_p0 = scmp.ne.s32.totalorder %s3048_s5, %s2722_s15  ;;  %p2726_p1 = scmp.lt.u32.totalorder %s2722_s15, %s3048_s5 }
   0x7   :  { %p2728_p2 = pnand %p2726_p1, %p2723_p0 }
   0x9   :  { %2731 = shalt.err (!%p2728_p2)
}
   0xa   :  { %s2732_s20 = scalar_lea.vmem %s43_s10, 12800  ;;  %p2737_p4 = scmp.lt.s32.totalorder %s43_s10, %s43_s10 }
   0xb   :  { %p2733_p3 = scmp.ne.s32.totalorder %s43_s10, %s2732_s20  ;;  %p2738_p5 = scmp.lt.s32.totalorder %s2732_s20, %s2732_s20 }
   0xd   :  { %p2739_p6 = por %p2738_p5, %p2737_p4 }
   0xf   :  { %p2740_p7 = pnand %p2739_p6, %p2733_p3 }
  0x11   :  { %2743 = shalt.err (!%p2740_p7)
}
  0x12   :  { %s2818_s21 = smov 256   ;;  %s2819_s22 = smov 16  }
  0x13   :  { %48 = dma.hbm_to_vmem [thread:$0]  %s3048_s5, 12800, %s43_s10, [#allocation6], %s2818_s21, %s2818_s21, %s2819_s22  }
  0x14   :  { %s2744_s27 = scalar_lea.hbm %s3046_s3, 12800 }
  0x15   :  { %p2745_p8 = scmp.ne.s32.totalorder %s3046_s3, %s2744_s27  ;;  %p2748_p9 = scmp.lt.u32.totalorder %s2744_s27, %s3046_s3 }
  0x17   :  { %p2750_p10 = pnand %p2748_p9, %p2745_p8 }
  0x19   :  { %2753 = shalt.err (!%p2750_p10)
}
  0x1a   :  { %s2754_s13 = scalar_lea.vmem %s2876_s12, 12800  ;;  %p2759_p12 = scmp.lt.s32.totalorder %s2876_s12, %s2876_s12 }
  0x1b   :  { %p2755_p11 = scmp.ne.s32.totalorder %s2876_s12, %s2754_s13  ;;  %p2760_p13 = scmp.lt.s32.totalorder %s2754_s13, %s2754_s13 }
  0x1d   :  { %p2761_p0 = por %p2760_p13, %p2759_p12 }
  0x1f   :  { %p2762_p1 = pnand %p2761_p0, %p2755_p11 }
  0x21   :  { %2765 = shalt.err (!%p2762_p1)
}
  0x22   :  { %34 = dma.hbm_to_vmem [thread:$0]  %s3046_s3, 12800, %s2876_s12, [#allocation3], %s2818_s21, %s2818_s21, %s2819_s22  }
  0x23   :  { %s2820_s14 = smov [#allocation7]   ;;  %s2766_s18 = scalar_lea.hbm %s3050_s7, 3200 }
  0x24   :  { %s56_s15 = sshll.u32 %s2820_s14, 4  ;;  %p2767_p2 = scmp.ne.s32.totalorder %s3050_s7, %s2766_s18  ;;  %s57_s15 = int_to_ptr.vmem [resolvable:$true] %s56_s15 }
  0x25   :  { %p2770_p3 = scmp.lt.u32.totalorder %s2766_s18, %s3050_s7 }
  0x27   :  { %p2772_p4 = pnand %p2770_p3, %p2767_p2 }
  0x29   :  { %2775 = shalt.err (!%p2772_p4)
}
  0x2a   :  { %s2776_s25 = scalar_lea.vmem %s57_s15, 3200  ;;  %p2781_p6 = scmp.lt.s32.totalorder %s57_s15, %s57_s15 }
  0x2b   :  { %p2777_p5 = scmp.ne.s32.totalorder %s57_s15, %s2776_s25  ;;  %p2782_p7 = scmp.lt.s32.totalorder %s2776_s25, %s2776_s25 }
  0x2d   :  { %p2783_p8 = por %p2782_p7, %p2781_p6 }
  0x2f   :  { %p2784_p9 = pnand %p2783_p8, %p2777_p5 }
  0x31   :  { %2787 = shalt.err (!%p2784_p9)
}
  0x32   :  { %s2821_s3 = smov 64   ;;  %s2822_s12 = smov 4  }
  0x33   :  { %62 = dma.hbm_to_vmem [thread:$0]  %s3050_s7, 3200, %s57_s15, [#allocation6], %s2821_s3, %s2821_s3, %s2822_s12  }
  0x34   :  { %2810 = dma.done.wait [#allocation3], 12800  }
  0x35   :  { %2811 = vsyncadd [#allocation3], 4294954496 }
  0x36   :  { %2812 = dma.done.wait [#allocation6], 16000  }
  0x37   :  { %2813 = vsyncadd [#allocation6], 4294951296  ;;  %v2823_v0 = vmov 0   ;;  %v75_v1 = vld [vmem:[%s3043_s0] sm:$0xff]  ;;  %v2397_v2 = vld [vmem:[#allocation2 + $0x4] ss:$16 sps:$4 sm:$0xff]  }
  0x38   :  { %2395 = vset.pattern.permute.xlu0 %v2823_v0  ;;  %v2399_v3 = vld [vmem:[#allocation2 + $0xc] ss:$16 sps:$4 sm:$0xff]   ;;  %v2401_v4 = vld [vmem:[#allocation2] ss:$16 sps:$4 sm:$0xff]   ;;  %v2402_v5 = vld [vmem:[#allocation2 + $0x8] ss:$16 sps:$4 sm:$0xff]   ;;  %832 = vmatprep.subr.bf16.mxu0 %v2397_v2 }
  0x39   :  { %80 = vperm.xlu0 %2395, %v75_v1   ;;  %v2403_v6 = vld [vmem:[#allocation2 + $0x24] ss:$16 sps:$4 sm:$0xff]   ;;  %914 = vmatprep.subr.bf16.mxu1 %v2399_v3  ;;  %v2405_v7 = vld [vmem:[#allocation2 + $0x2c] ss:$16 sps:$4 sm:$0xff]   ;;  %v2824_v8 = vmov 1   ;;  %vm828_vm0 = vcmask 130048  }
  0x3a   :  { %833 = vmatpush1.bf16.msra.mxu0 %v2401_v4  ;;  %915 = vmatpush1.bf16.msra.mxu1 %v2402_v5  ;;  %v2407_v9 = vld [vmem:[#allocation2 + $0x20] ss:$16 sps:$4 sm:$0xff]   ;;  %v2408_v10 = vld [vmem:[#allocation2 + $0x28] ss:$16 sps:$4 sm:$0xff]   ;;  %v2409_v11 = vld [vmem:[#allocation2 + $0x44] ss:$16 sps:$4 sm:$0xff]  }
  0x3b   :  { %834 = vmatprep.subr.bf16.mxu0 %v2403_v6  ;;  %916 = vmatprep.subr.bf16.mxu1 %v2405_v7  ;;  %v2411_v12 = vld [vmem:[#allocation2 + $0x4c] ss:$16 sps:$4 sm:$0xff]   ;;  %v2413_v13 = vld [vmem:[#allocation2 + $0x40] ss:$16 sps:$4 sm:$0xff]   ;;  %v2414_v14 = vld [vmem:[#allocation2 + $0x48] ss:$16 sps:$4 sm:$0xff]   ;;  %v84_v6 = vlaneseq }
  0x3c   :  { %v2415_v15 = vld [vmem:[#allocation2 + $0x64] ss:$16 sps:$4 sm:$0xff]   ;;  %v2417_v16 = vld [vmem:[#allocation2 + $0x6c] ss:$16 sps:$4 sm:$0xff]   ;;  %v2419_v17 = vld [vmem:[#allocation2 + $0x60] ss:$16 sps:$4 sm:$0xff]  }
  0x3d   :  { %2396 = vset.pattern.permute.xlu0 %v2824_v8  ;;  %v2420_v18 = vld [vmem:[#allocation2 + $0x68] ss:$16 sps:$4 sm:$0xff]   ;;  %v2421_v19 = vld [vmem:[#allocation2 + $0x84] ss:$16 sps:$4 sm:$0xff]   ;;  %v2423_v20 = vld [vmem:[#allocation2 + $0x8c] ss:$16 sps:$4 sm:$0xff]  }
  0x3e   :  { %125 = vperm.xlu0 %2396, %v75_v1   ;;  %835 = vmatpush1.bf16.msra.mxu0 %v2407_v9  ;;  %v2425_v21 = vld [vmem:[#allocation2 + $0x80] ss:$16 sps:$4 sm:$0xff]   ;;  %v2426_v22 = vld [vmem:[#allocation2 + $0x88] ss:$16 sps:$4 sm:$0xff]   ;;  %v2427_v23 = vld [vmem:[#allocation2 + $0xa4] ss:$16 sps:$4 sm:$0xff]  }
  0x3f   :  { %917 = vmatpush1.bf16.msra.mxu1 %v2408_v10  ;;  %836 = vmatprep.subr.bf16.mxu0 %v2409_v11  ;;  %v2429_v24 = vld [vmem:[#allocation2 + $0xac] ss:$16 sps:$4 sm:$0xff]   ;;  %v2431_v25 = vld [vmem:[#allocation2 + $0xa0] ss:$16 sps:$4 sm:$0xff]   ;;  %v2432_v26 = vld [vmem:[#allocation2 + $0xa8] ss:$16 sps:$4 sm:$0xff]  }
  0x40   :  { %918 = vmatprep.subr.bf16.mxu1 %v2411_v12  ;;  %v2433_v27 = vld [vmem:[#allocation2 + $0xc4] ss:$16 sps:$4 sm:$0xff]   ;;  %v2435_v28 = vld [vmem:[#allocation2 + $0xcc] ss:$16 sps:$4 sm:$0xff]   ;;  %v2437_v29 = vld [vmem:[#allocation2 + $0xc0] ss:$16 sps:$4 sm:$0xff]  }
  0x41   :  { %v2438_v30 = vld [vmem:[#allocation2 + $0xc8] ss:$16 sps:$4 sm:$0xff]   ;;  %v2439_v31 = vld [vmem:[#allocation2 + $0xe4] ss:$16 sps:$4 sm:$0xff]   ;;  %v2441_v32 = vld [vmem:[#allocation2 + $0xec] ss:$16 sps:$4 sm:$0xff]  }
  0x42   :  { %837 = vmatpush1.bf16.msra.mxu0 %v2413_v13  ;;  %v2443_v33 = vld [vmem:[#allocation2 + $0xe0] ss:$16 sps:$4 sm:$0xff]   ;;  %v2444_v34 = vld [vmem:[#allocation2 + $0xe8] ss:$16 sps:$4 sm:$0xff]   ;;  %v2445_v35 = vld [vmem:[#allocation2 + $0x104] ss:$16 sps:$4 sm:$0xff]  }
  0x43   :  { %919 = vmatpush1.bf16.msra.mxu1 %v2414_v14  ;;  %838 = vmatprep.subr.bf16.mxu0 %v2415_v15  ;;  %v2447_v36 = vld [vmem:[#allocation2 + $0x10c] ss:$16 sps:$4 sm:$0xff]   ;;  %v2449_v37 = vld [vmem:[#allocation2 + $0x100] ss:$16 sps:$4 sm:$0xff]   ;;  %v2450_v38 = vld [vmem:[#allocation2 + $0x108] ss:$16 sps:$4 sm:$0xff]  }
  0x44   :  { %920 = vmatprep.subr.bf16.mxu1 %v2417_v16  ;;  %v2451_v39 = vld [vmem:[#allocation2 + $0x124] ss:$16 sps:$4 sm:$0xff]   ;;  %v2453_v40 = vld [vmem:[#allocation2 + $0x12c] ss:$16 sps:$4 sm:$0xff]   ;;  %v2455_v41 = vld [vmem:[#allocation2 + $0x120] ss:$16 sps:$4 sm:$0xff]  }
  0x45   :  { %v2456_v42 = vld [vmem:[#allocation2 + $0x128] ss:$16 sps:$4 sm:$0xff]   ;;  %v2457_v43 = vld [vmem:[#allocation2 + $0x144] ss:$16 sps:$4 sm:$0xff]   ;;  %v2459_v44 = vld [vmem:[#allocation2 + $0x14c] ss:$16 sps:$4 sm:$0xff]  }
  0x46   :  { %839 = vmatpush1.bf16.msra.mxu0 %v2419_v17  ;;  %v2461_v45 = vld [vmem:[#allocation2 + $0x140] ss:$16 sps:$4 sm:$0xff]   ;;  %v2462_v46 = vld [vmem:[#allocation2 + $0x148] ss:$16 sps:$4 sm:$0xff]   ;;  %v2463_v47 = vld [vmem:[#allocation2 + $0x164] ss:$16 sps:$4 sm:$0xff]  }
  0x47   :  { %921 = vmatpush1.bf16.msra.mxu1 %v2420_v18  ;;  %840 = vmatprep.subr.bf16.mxu0 %v2421_v19  ;;  %v2465_v48 = vld [vmem:[#allocation2 + $0x16c] ss:$16 sps:$4 sm:$0xff]   ;;  %v2467_v49 = vld [vmem:[#allocation2 + $0x160] ss:$16 sps:$4 sm:$0xff]   ;;  %v2468_v50 = vld [vmem:[#allocation2 + $0x168] ss:$16 sps:$4 sm:$0xff]  }
  0x48   :  { %922 = vmatprep.subr.bf16.mxu1 %v2423_v20  ;;  %v2469_v51 = vld [vmem:[#allocation2 + $0x184] ss:$16 sps:$4 sm:$0xff]   ;;  %v2471_v52 = vld [vmem:[#allocation2 + $0x18c] ss:$16 sps:$4 sm:$0xff]   ;;  %v2473_v53 = vld [vmem:[#allocation2 + $0x180] ss:$16 sps:$4 sm:$0xff]  }
  0x49   :  { %v2474_v54 = vld [vmem:[#allocation2 + $0x188] ss:$16 sps:$4 sm:$0xff]   ;;  %v2475_v55 = vld [vmem:[#allocation2 + $0x1a4] ss:$16 sps:$4 sm:$0xff]   ;;  %v2477_v56 = vld [vmem:[#allocation2 + $0x1ac] ss:$16 sps:$4 sm:$0xff]  }
  0x4a   :  { %841 = vmatpush1.bf16.msra.mxu0 %v2425_v21  ;;  %v2479_v57 = vld [vmem:[#allocation2 + $0x1a0] ss:$16 sps:$4 sm:$0xff]   ;;  %v2480_v58 = vld [vmem:[#allocation2 + $0x1a8] ss:$16 sps:$4 sm:$0xff]   ;;  %v2481_v59 = vld [vmem:[#allocation2 + $0x1c4] ss:$16 sps:$4 sm:$0xff]  }
  0x4b   :  { %923 = vmatpush1.bf16.msra.mxu1 %v2426_v22  ;;  %842 = vmatprep.subr.bf16.mxu0 %v2427_v23  ;;  %v2483_v60 = vld [vmem:[#allocation2 + $0x1cc] ss:$16 sps:$4 sm:$0xff]   ;;  %v2485_v61 = vld [vmem:[#allocation2 + $0x1c0] ss:$16 sps:$4 sm:$0xff]   ;;  %v2486_v62 = vld [vmem:[#allocation2 + $0x1c8] ss:$16 sps:$4 sm:$0xff]  }
  0x4c   :  { %924 = vmatprep.subr.bf16.mxu1 %v2429_v24  ;;  %v2487_v63 = vld [vmem:[#allocation2 + $0x1e4] ss:$16 sps:$4 sm:$0xff]   ;;  %v2489_v1 = vld [vmem:[#allocation2 + $0x1ec] ss:$16 sps:$4 sm:$0xff]   ;;  %v2491_v2 = vld [vmem:[#allocation2 + $0x1e0] ss:$16 sps:$4 sm:$0xff]  }
  0x4d   :  { %v2492_v3 = vld [vmem:[#allocation2 + $0x1e8] ss:$16 sps:$4 sm:$0xff]   ;;  %v2495_v4 = vld [vmem:[#allocation2 + $0x204] ss:$16 sps:$4 sm:$0xff]   ;;  %v2498_v5 = vld [vmem:[#allocation2 + $0x20c] ss:$16 sps:$4 sm:$0xff]  }
  0x4e   :  { %843 = vmatpush1.bf16.msra.mxu0 %v2431_v25  ;;  %v2923_v7 = vshrl.u32 %v84_v6, 7  ;;  %v76_v8 = vld [vmem:[%s3044_s1] sm:$0xf]  ;;  %v2519_v6 = vld [vmem:[#allocation2 + $0x284] ss:$16 sps:$4 sm:$0xff]   ;;  %s2825_s13 = smov [#allocation8]  }
  0x4f   :  { %925 = vmatpush1.bf16.msra.mxu1 %v2432_v26  ;;  %844 = vmatprep.subr.bf16.mxu0 %v2433_v27  ;;  %v2942_v15 = vunpack.c.l.bf16 %v76_v8  ;;  %v2957_v22 = vld [vmem:[%s3045_s2] sm:$0xf]  ;;  %v2522_v8 = vld [vmem:[#allocation2 + $0x28c] ss:$16 sps:$4 sm:$0xff]   ;;  %s2098_s5 = sshll.u32 %s2825_s13, 4  ;;  %s2099_s5 = int_to_ptr.vmem [resolvable:$true] %s2098_s5 }
  0x50   :  { %926 = vmatprep.subr.bf16.mxu1 %v2435_v28  ;;  %v2929_v9 = vsub.s32 0, %v2923_v7  ;;  %v2932_v10 = vsub.s32 2, %v2923_v7  ;;  %v98_v11 = vsub.s32 6, %v2923_v7  ;;  %v2936_v12 = vsub.s32 1, %v2923_v7  ;;  %s2788_s10 = scalar_lea.vmem %s2099_s5, 128  ;;  %p2793_p11 = scmp.lt.s32.totalorder %s2099_s5, %s2099_s5 }
  0x51   :  { %v2939_v13 = vsub.s32 3, %v2923_v7  ;;  %v142_v14 = vsub.s32 7, %v2923_v7  ;;  %p2789_p10 = scmp.ne.s32.totalorder %s2099_s5, %s2788_s10  ;;  %p2794_p12 = scmp.lt.s32.totalorder %s2788_s10, %s2788_s10 }
  0x52   :  { %845 = vmatpush1.bf16.msra.mxu0 %v2437_v29  ;;  %v87_v16 = vrot.slane %v2942_v15, %v2929_v9  ;;  %v91_v17 = vrot.slane %v2942_v15, %v2932_v10  ;;  %v99_v18 = vrot.slane %v2942_v15, %v98_v11  ;;  %v131_v19 = vrot.slane %v2942_v15, %v2936_v12 }
  0x53   :  { %927 = vmatpush1.bf16.msra.mxu1 %v2438_v30  ;;  %846 = vmatprep.subr.bf16.mxu0 %v2439_v31  ;;  %v135_v20 = vrot.slane %v2942_v15, %v2939_v13  ;;  %v143_v21 = vrot.slane %v2942_v15, %v142_v14  ;;  %v189_v30 = vrot.slane %v2957_v22, %v2939_v13  ;;  %v2517_v14 = vld [vmem:[#allocation2 + $0x280] ss:$16 sps:$4 sm:$0xff]   ;;  %p2795_p13 = por %p2794_p12, %p2793_p11 }
  0x54   :  { %928 = vmatprep.subr.bf16.mxu1 %v2441_v32  ;;  %v107_v24 = vrot.slane %v87_v16, %v2929_v9  ;;  %v111_v25 = vrot.slane %v91_v17, %v2929_v9  ;;  %v119_v26 = vrot.slane %v99_v18, %v2929_v9  ;;  %v151_v27 = vrot.slane %v131_v19, %v2936_v12  ;;  %v2520_v16 = vld [vmem:[#allocation2 + $0x288] ss:$16 sps:$4 sm:$0xff]   ;;  %v2528_v18 = vld [vmem:[#allocation2 + $0x2ac] ss:$16 sps:$4 sm:$0xff]  }
  0x55   :  { %v155_v28 = vrot.slane %v135_v20, %v2936_v12  ;;  %v163_v29 = vrot.slane %v143_v21, %v2936_v12  ;;  %v2523_v20 = vld [vmem:[#allocation2 + $0x2a0] ss:$16 sps:$4 sm:$0xff]   ;;  %v2526_v21 = vld [vmem:[#allocation2 + $0x2a8] ss:$16 sps:$4 sm:$0xff]   ;;  %p2796_p0 = pnand %p2795_p13, %p2789_p10 }
  0x56   :  { %847 = vmatpush1.bf16.msra.mxu0 %v2443_v33 }
  0x57   :  { %929 = vmatpush1.bf16.msra.mxu1 %v2444_v34  ;;  %848 = vmatprep.subr.bf16.mxu0 %v2445_v35  ;;  %v181_v34 = vrot.slane %v2957_v22, %v2936_v12  ;;  %v177_v35 = vrot.slane %v2957_v22, %v2929_v9 }
  0x58   :  { %930 = vmatprep.subr.bf16.mxu1 %v2447_v36 }
  0x5a   :  { %849 = vmatpush1.bf16.msra.mxu0 %v2449_v37 }
  0x5b   :  { %931 = vmatpush1.bf16.msra.mxu1 %v2450_v38  ;;  %850 = vmatprep.subr.bf16.mxu0 %v2451_v39 }
  0x5c   :  { %932 = vmatprep.subr.bf16.mxu1 %v2453_v40 }
  0x5e   :  { %851 = vmatpush1.bf16.msra.mxu0 %v2455_v41 }
  0x5f   :  { %933 = vmatpush1.bf16.msra.mxu1 %v2456_v42  ;;  %852 = vmatprep.subr.bf16.mxu0 %v2457_v43 }
  0x60   :  { %934 = vmatprep.subr.bf16.mxu1 %v2459_v44 }
  0x62   :  { %853 = vmatpush1.bf16.msra.mxu0 %v2461_v45 }
  0x63   :  { %935 = vmatpush1.bf16.msra.mxu1 %v2462_v46  ;;  %854 = vmatprep.subr.bf16.mxu0 %v2463_v47 }
  0x64   :  { %936 = vmatprep.subr.bf16.mxu1 %v2465_v48 }
  0x66   :  { %855 = vmatpush1.bf16.msra.mxu0 %v2467_v49 }
  0x67   :  { %937 = vmatpush1.bf16.msra.mxu1 %v2468_v50  ;;  %856 = vmatprep.subr.bf16.mxu0 %v2469_v51  ;;  %v2493_v50 = vld [vmem:[#allocation2 + $0x200] ss:$16 sps:$4 sm:$0xff]   ;;  %v2496_v51 = vld [vmem:[#allocation2 + $0x208] ss:$16 sps:$4 sm:$0xff]  }
  0x68   :  { %938 = vmatprep.subr.bf16.mxu1 %v2471_v52 }
  0x6a   :  { %857 = vmatpush1.bf16.msra.mxu0 %v2473_v53  ;;  %v2501_v53 = vld [vmem:[#allocation2 + $0x224] ss:$16 sps:$4 sm:$0xff]  }
  0x6b   :  { %939 = vmatpush1.bf16.msra.mxu1 %v2474_v54  ;;  %858 = vmatprep.subr.bf16.mxu0 %v2475_v55  ;;  %v2504_v54 = vld [vmem:[#allocation2 + $0x22c] ss:$16 sps:$4 sm:$0xff]  }
  0x6c   :  { %940 = vmatprep.subr.bf16.mxu1 %v2477_v56  ;;  %v2499_v56 = vld [vmem:[#allocation2 + $0x220] ss:$16 sps:$4 sm:$0xff]  }
  0x6e   :  { %859 = vmatpush1.bf16.msra.mxu0 %v2479_v57  ;;  %v2502_v57 = vld [vmem:[#allocation2 + $0x228] ss:$16 sps:$4 sm:$0xff]  }
  0x6f   :  { %941 = vmatpush1.bf16.msra.mxu1 %v2480_v58  ;;  %860 = vmatprep.subr.bf16.mxu0 %v2481_v59  ;;  %v2507_v58 = vld [vmem:[#allocation2 + $0x244] ss:$16 sps:$4 sm:$0xff]   ;;  %v2510_v59 = vld [vmem:[#allocation2 + $0x24c] ss:$16 sps:$4 sm:$0xff]  }
  0x70   :  { %942 = vmatprep.subr.bf16.mxu1 %v2483_v60  ;;  %v2505_v60 = vld [vmem:[#allocation2 + $0x240] ss:$16 sps:$4 sm:$0xff]  }
  0x72   :  { %861 = vmatpush1.bf16.msra.mxu0 %v2485_v61  ;;  %v2508_v61 = vld [vmem:[#allocation2 + $0x248] ss:$16 sps:$4 sm:$0xff]  }
  0x73   :  { %943 = vmatpush1.bf16.msra.mxu1 %v2486_v62  ;;  %862 = vmatprep.subr.bf16.mxu0 %v2487_v63  ;;  %v138_v62 = vsub.s32 5, %v2923_v7  ;;  %v2513_v63 = vld [vmem:[#allocation2 + $0x264] ss:$16 sps:$4 sm:$0xff]  }
  0x74   :  { %944 = vmatprep.subr.bf16.mxu1 %v2489_v1  ;;  %v2516_v1 = vld [vmem:[#allocation2 + $0x26c] ss:$16 sps:$4 sm:$0xff]  }
  0x76   :  { %863 = vmatpush1.bf16.msra.mxu0 %v2491_v2  ;;  %v94_v2 = vsub.s32 4, %v2923_v7  ;;  %v2525_v7 = vld [vmem:[#allocation2 + $0x2a4] ss:$16 sps:$4 sm:$0xff]  }
  0x77   :  { %945 = vmatpush1.bf16.msra.mxu1 %v2492_v3  ;;  %873 = vmatprep.subr.bf16.mxu0 %v2495_v4  ;;  %v2511_v3 = vld [vmem:[#allocation2 + $0x260] ss:$16 sps:$4 sm:$0xff]   ;;  %v2514_v4 = vld [vmem:[#allocation2 + $0x268] ss:$16 sps:$4 sm:$0xff]  }
  0x78   :  { %955 = vmatprep.subr.bf16.mxu1 %v2498_v5  ;;  %v139_v5 = vrot.slane %v2942_v15, %v138_v62  ;;  %v95_v11 = vrot.slane %v2942_v15, %v94_v2  ;;  %v2531_v15 = vld [vmem:[#allocation2 + $0x2c4] ss:$16 sps:$4 sm:$0xff]   ;;  %v2577_v62 = vld [vmem:[#allocation5 + $0xa0] ss:$16 sps:$4 sm:$0xff]   ;;  %v2588_v2 = vld [vmem:[#allocation5 + $0xcc] ss:$16 sps:$4 sm:$0xff]  }
  0x7a   :  { %v159_v17 = vrot.slane %v139_v5, %v2936_v12  ;;  %v115_v19 = vrot.slane %v95_v11, %v2929_v9  ;;  %v2591_v5 = vld [vmem:[#allocation5 + $0xe4] ss:$16 sps:$4 sm:$0xff]   ;;  %v2592_v11 = vld [vmem:[#allocation5 + $0xe8] ss:$16 sps:$4 sm:$0xff]  }
  0xb8   :  { %v2959_v23 = vpop.permute.xlu0 %80 }
  0xb9   :  { %v120_v31 = vmul.f32 %v107_v24, %v2959_v23  ;;  %v121_v32 = vmul.f32 %v111_v25, %v2959_v23  ;;  %v123_v36 = vmul.f32 %v119_v26, %v2959_v23  ;;  %v2534_v25 = vld [vmem:[#allocation2 + $0x2cc] ss:$16 sps:$4 sm:$0xff]   ;;  %v122_v26 = vmul.f32 %v115_v19, %v2959_v23  ;;  %v2543_v23 = vld [vmem:[#allocation2 + $0x304] ss:$16 sps:$4 sm:$0xff]  }
  0xba   :  { %v2606_v19 = vld [vmem:[#allocation5 + $0x12c] ss:$16 sps:$4 sm:$0xff]  }
  0xbd   :  { %v2971_v33 = vpop.permute.xlu0 %125 }
  0xbe   :  { %v164_v37 = vmul.f32 %v151_v27, %v2971_v33  ;;  %v165_v38 = vmul.f32 %v155_v28, %v2971_v33  ;;  %v167_v39 = vmul.f32 %v163_v29, %v2971_v33  ;;  %v166_v24 = vmul.f32 %v159_v17, %v2971_v33  ;;  %v2529_v27 = vld [vmem:[#allocation2 + $0x2c0] ss:$16 sps:$4 sm:$0xff]   ;;  %v2532_v28 = vld [vmem:[#allocation2 + $0x2c8] ss:$16 sps:$4 sm:$0xff]  }
  0xbf   :  { %v185_v29 = vrot.slane %v2957_v22, %v2932_v10  ;;  %v2535_v33 = vld [vmem:[#allocation2 + $0x2e0] ss:$16 sps:$4 sm:$0xff]  }
  0xc0   :  { %v168_v40 = vadd.f32 %v164_v37, %v120_v31  ;;  %v171_v41 = vadd.f32 %v167_v39, %v123_v36  ;;  %v169_v42 = vadd.f32 %v165_v38, %v121_v32  ;;  %v2537_v31 = vld [vmem:[#allocation2 + $0x2e4] ss:$16 sps:$4 sm:$0xff]   ;;  %v2540_v32 = vld [vmem:[#allocation2 + $0x2ec] ss:$16 sps:$4 sm:$0xff]   ;;  %v2541_v37 = vld [vmem:[#allocation2 + $0x300] ss:$16 sps:$4 sm:$0xff]  }
  0xc1   :  { %v2546_v36 = vld [vmem:[#allocation2 + $0x30c] ss:$16 sps:$4 sm:$0xff]   ;;  %v2544_v38 = vld [vmem:[#allocation2 + $0x308] ss:$16 sps:$4 sm:$0xff]   ;;  %v2549_v39 = vld [vmem:[#allocation5 + $0x4] ss:$16 sps:$4 sm:$0xff]  }
  0xc2   :  { %v197_v43 = vadd.f32 %v189_v30, %v171_v41  ;;  %v195_v44 = vadd.f32 %v181_v34, %v169_v42  ;;  %v194_v45 = vadd.f32 %v177_v35, %v168_v40  ;;  %v170_v30 = vadd.f32 %v166_v24, %v122_v26  ;;  %v2538_v34 = vld [vmem:[#allocation2 + $0x2e8] ss:$16 sps:$4 sm:$0xff]   ;;  %v2552_v40 = vld [vmem:[#allocation5 + $0xc] ss:$16 sps:$4 sm:$0xff]   ;;  %v2547_v41 = vld [vmem:[#allocation5] ss:$16 sps:$4 sm:$0xff]  }
  0xc3   :  { %v2550_v42 = vld [vmem:[#allocation5 + $0x8] ss:$16 sps:$4 sm:$0xff]   ;;  %v2595_v17 = vld [vmem:[#allocation5 + $0x100] ss:$16 sps:$4 sm:$0xff]   ;;  %v2609_v24 = vld [vmem:[#allocation5 + $0x144] ss:$16 sps:$4 sm:$0xff]  }
  0xc4   :  { %v199_v46 = vmax.f32 %v195_v44, 0.0  ;;  %v198_v47 = vmax.f32 %v194_v45, 0.0  ;;  %v201_v48 = vmax.f32 %v197_v43, 0.0  ;;  %v196_v35 = vadd.f32 %v185_v29, %v170_v30  ;;  %v2555_v44 = vld [vmem:[#allocation5 + $0x24] ss:$16 sps:$4 sm:$0xff]  }
  0xc5   :  { %v2558_v45 = vld [vmem:[#allocation5 + $0x2c] ss:$16 sps:$4 sm:$0xff]   ;;  %v2610_v26 = vld [vmem:[#allocation5 + $0x148] ss:$16 sps:$4 sm:$0xff]   ;;  %v2613_v29 = vld [vmem:[#allocation5 + $0x160] ss:$16 sps:$4 sm:$0xff]  }
  0xc6   :  { %v203_v49 = vpack.c.bf16 %v199_v46, %v199_v46  ;;  %v202_v52 = vpack.c.bf16 %v198_v47, %v198_v47  ;;  %v205_v55 = vpack.c.bf16 %v201_v48, %v201_v48  ;;  %v200_v22 = vmax.f32 %v196_v35, 0.0  ;;  %v2553_v46 = vld [vmem:[#allocation5 + $0x20] ss:$16 sps:$4 sm:$0xff]   ;;  %v2556_v47 = vld [vmem:[#allocation5 + $0x28] ss:$16 sps:$4 sm:$0xff]  }
  0xc7   :  { %v2561_v48 = vld [vmem:[#allocation5 + $0x44] ss:$16 sps:$4 sm:$0xff]   ;;  %v2616_v30 = vld [vmem:[#allocation5 + $0x168] ss:$16 sps:$4 sm:$0xff]  }
  0xc8   :  { %864 = vmatprep.mubr.bf16.mxu0 %v203_v49  ;;  %946 = vmatprep.mubr.bf16.mxu1 %v203_v49  ;;  %v204_v43 = vpack.c.bf16 %v200_v22, %v200_v22  ;;  %v2564_v49 = vld [vmem:[#allocation5 + $0x4c] ss:$16 sps:$4 sm:$0xff]   ;;  %v2627_v35 = vld [vmem:[#allocation5 + $0x1a4] ss:$16 sps:$4 sm:$0xff]  }
  0xc9   :  { %865 = vmatmul.mubr.bf16.vlgmr.msra.gmra.mrb[0].mxu0 %v202_v52  ;;  %947 = vmatmul.mubr.bf16.vlgmr.msra.gmra.mrb[0].mxu1 %v202_v52  ;;  %v2567_v52 = vld [vmem:[#allocation5 + $0x64] ss:$16 sps:$4 sm:$0xff]   ;;  %v2636_v22 = vld [vmem:[#allocation5 + $0x1cc] ss:$16 sps:$4 sm:$0xff]  }
  0xca   :  { %874 = vmatpush1.bf16.msra.mxu0 %v2493_v50  ;;  %956 = vmatpush1.bf16.msra.mxu1 %v2496_v51  ;;  %v2559_v50 = vld [vmem:[#allocation5 + $0x40] ss:$16 sps:$4 sm:$0xff]   ;;  %v2562_v51 = vld [vmem:[#allocation5 + $0x48] ss:$16 sps:$4 sm:$0xff]  }
  0xcb   :  { %2208 = vmatprep.mubr.msk.bf16.mxu0 %vm828_vm0, %v205_v55  ;;  %2209 = vmatprep.mubr.msk.bf16.mxu1 %vm828_vm0, %v205_v55  ;;  %v2568_v55 = vld [vmem:[#allocation5 + $0x68] ss:$16 sps:$4 sm:$0xff]  }
  0xcc   :  { %875 = vmatprep.subr.bf16.mxu0 %v2501_v53  ;;  %957 = vmatprep.subr.bf16.mxu1 %v2504_v54  ;;  %v2570_v53 = vld [vmem:[#allocation5 + $0x6c] ss:$16 sps:$4 sm:$0xff]   ;;  %v2565_v54 = vld [vmem:[#allocation5 + $0x60] ss:$16 sps:$4 sm:$0xff]  }
  0xce   :  { %876 = vmatpush1.bf16.msra.mxu0 %v2499_v56  ;;  %958 = vmatpush1.bf16.msra.mxu1 %v2502_v57  ;;  %v2573_v56 = vld [vmem:[#allocation5 + $0x84] ss:$16 sps:$4 sm:$0xff]   ;;  %v2576_v57 = vld [vmem:[#allocation5 + $0x8c] ss:$16 sps:$4 sm:$0xff]  }
  0xcf   :  { %877 = vmatprep.subr.bf16.mxu0 %v2507_v58  ;;  %959 = vmatprep.subr.bf16.mxu1 %v2510_v59  ;;  %v2571_v58 = vld [vmem:[#allocation5 + $0x80] ss:$16 sps:$4 sm:$0xff]   ;;  %v2574_v59 = vld [vmem:[#allocation5 + $0x88] ss:$16 sps:$4 sm:$0xff]  }
  0xd2   :  { %878 = vmatpush1.bf16.msra.mxu0 %v2505_v60  ;;  %960 = vmatpush1.bf16.msra.mxu1 %v2508_v61  ;;  %v2579_v60 = vld [vmem:[#allocation5 + $0xa4] ss:$16 sps:$4 sm:$0xff]   ;;  %v2582_v61 = vld [vmem:[#allocation5 + $0xac] ss:$16 sps:$4 sm:$0xff]  }
  0xd3   :  { %879 = vmatprep.subr.bf16.mxu0 %v2513_v63  ;;  %961 = vmatprep.subr.bf16.mxu1 %v2516_v1  ;;  %v2580_v63 = vld [vmem:[#allocation5 + $0xa8] ss:$16 sps:$4 sm:$0xff]   ;;  %v2585_v1 = vld [vmem:[#allocation5 + $0xc4] ss:$16 sps:$4 sm:$0xff]  }
  0xd6   :  { %880 = vmatpush1.bf16.msra.mxu0 %v2511_v3  ;;  %962 = vmatpush1.bf16.msra.mxu1 %v2514_v4  ;;  %v2583_v3 = vld [vmem:[#allocation5 + $0xc0] ss:$16 sps:$4 sm:$0xff]   ;;  %v2586_v4 = vld [vmem:[#allocation5 + $0xc8] ss:$16 sps:$4 sm:$0xff]  }
  0xd7   :  { %881 = vmatprep.subr.bf16.mxu0 %v2519_v6  ;;  %963 = vmatprep.subr.bf16.mxu1 %v2522_v8  ;;  %v2594_v6 = vld [vmem:[#allocation5 + $0xec] ss:$16 sps:$4 sm:$0xff]   ;;  %v2589_v8 = vld [vmem:[#allocation5 + $0xe0] ss:$16 sps:$4 sm:$0xff]  }
  0xda   :  { %882 = vmatpush1.bf16.msra.mxu0 %v2517_v14  ;;  %964 = vmatpush1.bf16.msra.mxu1 %v2520_v16  ;;  %v2597_v14 = vld [vmem:[#allocation5 + $0x104] ss:$16 sps:$4 sm:$0xff]   ;;  %v2600_v16 = vld [vmem:[#allocation5 + $0x10c] ss:$16 sps:$4 sm:$0xff]  }
  0xdb   :  { %883 = vmatprep.subr.bf16.mxu0 %v2525_v7  ;;  %965 = vmatprep.subr.bf16.mxu1 %v2528_v18  ;;  %v2598_v7 = vld [vmem:[#allocation5 + $0x108] ss:$16 sps:$4 sm:$0xff]   ;;  %v2603_v18 = vld [vmem:[#allocation5 + $0x124] ss:$16 sps:$4 sm:$0xff]  }
  0xde   :  { %884 = vmatpush1.bf16.msra.mxu0 %v2523_v20  ;;  %966 = vmatpush1.bf16.msra.mxu1 %v2526_v21  ;;  %v2601_v20 = vld [vmem:[#allocation5 + $0x120] ss:$16 sps:$4 sm:$0xff]   ;;  %v2604_v21 = vld [vmem:[#allocation5 + $0x128] ss:$16 sps:$4 sm:$0xff]  }
  0xdf   :  { %885 = vmatprep.subr.bf16.mxu0 %v2531_v15  ;;  %967 = vmatprep.subr.bf16.mxu1 %v2534_v25  ;;  %v2612_v15 = vld [vmem:[#allocation5 + $0x14c] ss:$16 sps:$4 sm:$0xff]   ;;  %v2607_v25 = vld [vmem:[#allocation5 + $0x140] ss:$16 sps:$4 sm:$0xff]  }
  0xe2   :  { %886 = vmatpush1.bf16.msra.mxu0 %v2529_v27  ;;  %968 = vmatpush1.bf16.msra.mxu1 %v2532_v28  ;;  %v2615_v27 = vld [vmem:[#allocation5 + $0x164] ss:$16 sps:$4 sm:$0xff]   ;;  %v2618_v28 = vld [vmem:[#allocation5 + $0x16c] ss:$16 sps:$4 sm:$0xff]  }
  0xe3   :  { %887 = vmatprep.subr.bf16.mxu0 %v2537_v31  ;;  %969 = vmatprep.subr.bf16.mxu1 %v2540_v32  ;;  %v2621_v31 = vld [vmem:[#allocation5 + $0x184] ss:$16 sps:$4 sm:$0xff]   ;;  %v2624_v32 = vld [vmem:[#allocation5 + $0x18c] ss:$16 sps:$4 sm:$0xff]  }
  0xe6   :  { %888 = vmatpush1.bf16.msra.mxu0 %v2535_v33  ;;  %970 = vmatpush1.bf16.msra.mxu1 %v2538_v34  ;;  %v2619_v33 = vld [vmem:[#allocation5 + $0x180] ss:$16 sps:$4 sm:$0xff]   ;;  %v2622_v34 = vld [vmem:[#allocation5 + $0x188] ss:$16 sps:$4 sm:$0xff]  }
  0xe7   :  { %889 = vmatprep.subr.bf16.mxu0 %v2543_v23  ;;  %971 = vmatprep.subr.bf16.mxu1 %v2546_v36  ;;  %v2630_v23 = vld [vmem:[#allocation5 + $0x1ac] ss:$16 sps:$4 sm:$0xff]   ;;  %v2625_v36 = vld [vmem:[#allocation5 + $0x1a0] ss:$16 sps:$4 sm:$0xff]  }
  0xea   :  { %890 = vmatpush1.bf16.msra.mxu0 %v2541_v37  ;;  %972 = vmatpush1.bf16.msra.mxu1 %v2544_v38  ;;  %v2628_v37 = vld [vmem:[#allocation5 + $0x1a8] ss:$16 sps:$4 sm:$0xff]   ;;  %v2633_v38 = vld [vmem:[#allocation5 + $0x1c4] ss:$16 sps:$4 sm:$0xff]  }
  0xeb   :  { %1629 = vmatprep.subr.bf16.mxu0 %v2549_v39  ;;  %1711 = vmatprep.subr.bf16.mxu1 %v2552_v40  ;;  %v2631_v39 = vld [vmem:[#allocation5 + $0x1c0] ss:$16 sps:$4 sm:$0xff]   ;;  %v2634_v40 = vld [vmem:[#allocation5 + $0x1c8] ss:$16 sps:$4 sm:$0xff]  }
  0xed   :  { %906 = vmatmul.mubr.bf16.vlgmr.msra.gmra.mrb[0].mxu0 %v204_v43  ;;  %988 = vmatmul.mubr.bf16.vlgmr.msra.gmra.mrb[0].mxu1 %v204_v43  ;;  %v2637_v43 = vld [vmem:[#allocation5 + $0x1e0] ss:$16 sps:$4 sm:$0xff]  }
  0xee   :  { %1630 = vmatpush1.bf16.msra.mxu0 %v2547_v41  ;;  %1712 = vmatpush1.bf16.msra.mxu1 %v2550_v42  ;;  %v2639_v41 = vld [vmem:[#allocation5 + $0x1e4] ss:$16 sps:$4 sm:$0xff]   ;;  %v2642_v42 = vld [vmem:[#allocation5 + $0x1ec] ss:$16 sps:$4 sm:$0xff]  }
  0xef   :  { %1631 = vmatprep.subr.bf16.mxu0 %v2555_v44  ;;  %1713 = vmatprep.subr.bf16.mxu1 %v2558_v45  ;;  %v2640_v44 = vld [vmem:[#allocation5 + $0x1e8] ss:$16 sps:$4 sm:$0xff]   ;;  %v2645_v45 = vld [vmem:[#allocation5 + $0x204] ss:$16 sps:$4 sm:$0xff]  }
  0xf2   :  { %1632 = vmatpush1.bf16.msra.mxu0 %v2553_v46  ;;  %1714 = vmatpush1.bf16.msra.mxu1 %v2556_v47  ;;  %v2648_v46 = vld [vmem:[#allocation5 + $0x20c] ss:$16 sps:$4 sm:$0xff]   ;;  %v2996_v47 = vld [vmem:[%s3047_s4] sm:$0xf] }
  0xf3   :  { %1633 = vmatprep.subr.bf16.mxu0 %v2561_v48  ;;  %1715 = vmatprep.subr.bf16.mxu1 %v2564_v49  ;;  %v311_v48 = vrot.slane %v2996_v47, %v2929_v9  ;;  %v315_v49 = vrot.slane %v2996_v47, %v2936_v12 }
  0xf6   :  { %1634 = vmatpush1.bf16.msra.mxu0 %v2559_v50  ;;  %1716 = vmatpush1.bf16.msra.mxu1 %v2562_v51  ;;  %v323_v50 = vrot.slane %v2996_v47, %v2939_v13 }
  0xf7   :  { %1635 = vmatprep.subr.bf16.mxu0 %v2567_v52  ;;  %1717 = vmatprep.subr.bf16.mxu1 %v2570_v53 }
  0xfa   :  { %1636 = vmatpush1.bf16.msra.mxu0 %v2565_v54  ;;  %1718 = vmatpush1.bf16.msra.mxu1 %v2568_v55 }
  0xfb   :  { %1637 = vmatprep.subr.bf16.mxu0 %v2573_v56  ;;  %1719 = vmatprep.subr.bf16.mxu1 %v2576_v57 }
  0xfe   :  { %1638 = vmatpush1.bf16.msra.mxu0 %v2571_v58  ;;  %1720 = vmatpush1.bf16.msra.mxu1 %v2574_v59 }
  0xff   :  { %1639 = vmatprep.subr.bf16.mxu0 %v2579_v60  ;;  %1721 = vmatprep.subr.bf16.mxu1 %v2582_v61 }
 0x102   :  { %1640 = vmatpush1.bf16.msra.mxu0 %v2577_v62  ;;  %1722 = vmatpush1.bf16.msra.mxu1 %v2580_v63 }
 0x103   :  { %1641 = vmatprep.subr.bf16.mxu0 %v2585_v1  ;;  %1723 = vmatprep.subr.bf16.mxu1 %v2588_v2 }
 0x106   :  { %1642 = vmatpush1.bf16.msra.mxu0 %v2583_v3  ;;  %1724 = vmatpush1.bf16.msra.mxu1 %v2586_v4  ;;  %v2643_v3 = vld [vmem:[#allocation5 + $0x200] ss:$16 sps:$4 sm:$0xff]   ;;  %v2646_v4 = vld [vmem:[#allocation5 + $0x208] ss:$16 sps:$4 sm:$0xff]  }
 0x107   :  { %1643 = vmatprep.subr.bf16.mxu0 %v2591_v5  ;;  %1725 = vmatprep.subr.bf16.mxu1 %v2594_v6  ;;  %v2651_v6 = vld [vmem:[#allocation5 + $0x224] ss:$16 sps:$4 sm:$0xff]  }
 0x10a   :  { %1644 = vmatpush1.bf16.msra.mxu0 %v2589_v8  ;;  %1726 = vmatpush1.bf16.msra.mxu1 %v2592_v11  ;;  %v2654_v8 = vld [vmem:[#allocation5 + $0x22c] ss:$16 sps:$4 sm:$0xff]  }
 0x10b   :  { %1645 = vmatprep.subr.bf16.mxu0 %v2597_v14  ;;  %1727 = vmatprep.subr.bf16.mxu1 %v2600_v16  ;;  %v2649_v14 = vld [vmem:[#allocation5 + $0x220] ss:$16 sps:$4 sm:$0xff]   ;;  %v2652_v16 = vld [vmem:[#allocation5 + $0x228] ss:$16 sps:$4 sm:$0xff]  }
 0x10e   :  { %1646 = vmatpush1.bf16.msra.mxu0 %v2595_v17  ;;  %1728 = vmatpush1.bf16.msra.mxu1 %v2598_v7  ;;  %v2657_v17 = vld [vmem:[#allocation5 + $0x244] ss:$16 sps:$4 sm:$0xff]   ;;  %v2660_v7 = vld [vmem:[#allocation5 + $0x24c] ss:$16 sps:$4 sm:$0xff]  }
 0x10f   :  { %1647 = vmatprep.subr.bf16.mxu0 %v2603_v18  ;;  %1729 = vmatprep.subr.bf16.mxu1 %v2606_v19  ;;  %v2655_v18 = vld [vmem:[#allocation5 + $0x240] ss:$16 sps:$4 sm:$0xff]   ;;  %v2658_v19 = vld [vmem:[#allocation5 + $0x248] ss:$16 sps:$4 sm:$0xff]  }
 0x112   :  { %1648 = vmatpush1.bf16.msra.mxu0 %v2601_v20  ;;  %1730 = vmatpush1.bf16.msra.mxu1 %v2604_v21  ;;  %v2663_v20 = vld [vmem:[#allocation5 + $0x264] ss:$16 sps:$4 sm:$0xff]   ;;  %v2666_v21 = vld [vmem:[#allocation5 + $0x26c] ss:$16 sps:$4 sm:$0xff]  }
 0x113   :  { %1649 = vmatprep.subr.bf16.mxu0 %v2609_v24  ;;  %1731 = vmatprep.subr.bf16.mxu1 %v2612_v15  ;;  %v2661_v24 = vld [vmem:[#allocation5 + $0x260] ss:$16 sps:$4 sm:$0xff]   ;;  %v2664_v15 = vld [vmem:[#allocation5 + $0x268] ss:$16 sps:$4 sm:$0xff]  }
 0x116   :  { %1650 = vmatpush1.bf16.msra.mxu0 %v2607_v25  ;;  %1732 = vmatpush1.bf16.msra.mxu1 %v2610_v26  ;;  %v2669_v25 = vld [vmem:[#allocation5 + $0x284] ss:$16 sps:$4 sm:$0xff]   ;;  %v2672_v26 = vld [vmem:[#allocation5 + $0x28c] ss:$16 sps:$4 sm:$0xff]  }
 0x117   :  { %1651 = vmatprep.subr.bf16.mxu0 %v2615_v27  ;;  %1733 = vmatprep.subr.bf16.mxu1 %v2618_v28  ;;  %v2667_v27 = vld [vmem:[#allocation5 + $0x280] ss:$16 sps:$4 sm:$0xff]   ;;  %v2670_v28 = vld [vmem:[#allocation5 + $0x288] ss:$16 sps:$4 sm:$0xff]  }
 0x11a   :  { %1652 = vmatpush1.bf16.msra.mxu0 %v2613_v29  ;;  %1734 = vmatpush1.bf16.msra.mxu1 %v2616_v30  ;;  %v2675_v29 = vld [vmem:[#allocation5 + $0x2a4] ss:$16 sps:$4 sm:$0xff]   ;;  %v2678_v30 = vld [vmem:[#allocation5 + $0x2ac] ss:$16 sps:$4 sm:$0xff]  }
 0x11b   :  { %1653 = vmatprep.subr.bf16.mxu0 %v2621_v31  ;;  %1735 = vmatprep.subr.bf16.mxu1 %v2624_v32  ;;  %v2673_v31 = vld [vmem:[#allocation5 + $0x2a0] ss:$16 sps:$4 sm:$0xff]   ;;  %v2676_v32 = vld [vmem:[#allocation5 + $0x2a8] ss:$16 sps:$4 sm:$0xff]  }
 0x11e   :  { %1654 = vmatpush1.bf16.msra.mxu0 %v2619_v33  ;;  %1736 = vmatpush1.bf16.msra.mxu1 %v2622_v34  ;;  %v2681_v33 = vld [vmem:[#allocation5 + $0x2c4] ss:$16 sps:$4 sm:$0xff]   ;;  %v2684_v34 = vld [vmem:[#allocation5 + $0x2cc] ss:$16 sps:$4 sm:$0xff]  }
 0x11f   :  { %1655 = vmatprep.subr.bf16.mxu0 %v2627_v35  ;;  %1737 = vmatprep.subr.bf16.mxu1 %v2630_v23  ;;  %v2679_v35 = vld [vmem:[#allocation5 + $0x2c0] ss:$16 sps:$4 sm:$0xff]   ;;  %v2682_v23 = vld [vmem:[#allocation5 + $0x2c8] ss:$16 sps:$4 sm:$0xff]  }
 0x122   :  { %1656 = vmatpush1.bf16.msra.mxu0 %v2625_v36  ;;  %1738 = vmatpush1.bf16.msra.mxu1 %v2628_v37  ;;  %v319_v36 = vrot.slane %v2996_v47, %v2932_v10  ;;  %v2687_v37 = vld [vmem:[#allocation5 + $0x2e4] ss:$16 sps:$4 sm:$0xff]  }
 0x123   :  { %1657 = vmatprep.subr.bf16.mxu0 %v2633_v38  ;;  %1739 = vmatprep.subr.bf16.mxu1 %v2636_v22  ;;  %v2690_v38 = vld [vmem:[#allocation5 + $0x2ec] ss:$16 sps:$4 sm:$0xff]   ;;  %v2685_v22 = vld [vmem:[#allocation5 + $0x2e0] ss:$16 sps:$4 sm:$0xff]  }
 0x124   :  { %v2697_v47 = vld [vmem:[#allocation7 + $0x80] sm:$0xff]  }
 0x126   :  { %1658 = vmatpush1.bf16.msra.mxu0 %v2631_v39  ;;  %1740 = vmatpush1.bf16.msra.mxu1 %v2634_v40  ;;  %v2688_v39 = vld [vmem:[#allocation5 + $0x2e8] ss:$16 sps:$4 sm:$0xff]  }
 0x127   :  { %1659 = vmatprep.subr.bf16.mxu0 %v2639_v41  ;;  %1741 = vmatprep.subr.bf16.mxu1 %v2642_v42  ;;  %v2693_v41 = vld [vmem:[#allocation5 + $0x304] ss:$16 sps:$4 sm:$0xff]   ;;  %v2696_v42 = vld [vmem:[#allocation5 + $0x30c] ss:$16 sps:$4 sm:$0xff]  }
 0x12a   :  { %1660 = vmatpush1.bf16.msra.mxu0 %v2637_v43  ;;  %1742 = vmatpush1.bf16.msra.mxu1 %v2640_v44  ;;  %v2691_v43 = vld [vmem:[#allocation5 + $0x300] ss:$16 sps:$4 sm:$0xff]   ;;  %v2694_v44 = vld [vmem:[#allocation5 + $0x308] ss:$16 sps:$4 sm:$0xff]  }
 0x12b   :  { %1670 = vmatprep.subr.bf16.mxu0 %v2645_v45  ;;  %1752 = vmatprep.subr.bf16.mxu1 %v2648_v46  ;;  %v2698_v46 = vld [vmem:[#allocation7 + $0x40] sm:$0xff]  }
 0x1c0   :  { %v907_v51 = vpop.f32.mrb[0].mxu0  ;;  %v3004_v52 = vpop.f32.mrb[0].mxu1 }
 0x1c1   :  { %v2361_v53 = vadd.f32 %v907_v51, %v311_v48  ;;  %v909_v54 = vpop.f32.mrb[1].mxu0  ;;  %v991_v55 = vpop.f32.mrb[1].mxu1  ;;  %v2363_v40 = vadd.f32 %v3004_v52, %v319_v36  ;;  %v2699_v48 = vld [vmem:[#allocation7] sm:$0xff]   ;;  %v2700_v51 = vld [vmem:[#allocation7 + $0x88] sm:$0xff]   ;;  %v2312_v36 = vld [vmem:[%s3051_s8] ss:$0 sm:$0xff] }
 0x1c2   :  { %v2362_v56 = vadd.f32 %v909_v54, %v315_v49  ;;  %v2364_v57 = vadd.f32 %v991_v55, %v323_v50  ;;  %v911_v58 = vpop.f32.mrb[2].mxu0  ;;  %v993_v59 = vpop.f32.mrb[2].mxu1  ;;  %v2701_v50 = vld [vmem:[#allocation7 + $0x48] sm:$0xff]   ;;  %v2703_v54 = vld [vmem:[#allocation7 + $0x90] sm:$0xff]  }
 0x1c3   :  { %v996_v60 = vmax.f32 %v2361_v53, 0.0  ;;  %v912_v61 = vpop.f32.mrb[3].mxu0  ;;  %v994_v62 = vpop.f32.mrb[3].mxu1  ;;  %v998_v45 = vmax.f32 %v2363_v40, 0.0  ;;  %v2702_v52 = vld [vmem:[#allocation7 + $0x8] sm:$0xff]   ;;  %v2704_v53 = vld [vmem:[#allocation7 + $0x50] sm:$0xff]  }
 0x1c4   :  { %v997_v63 = vmax.f32 %v2362_v56, 0.0  ;;  %v999_v1 = vmax.f32 %v2364_v57, 0.0  ;;  %v2705_v55 = vld [vmem:[#allocation7 + $0x10] sm:$0xff]   ;;  %v2707_v56 = vld [vmem:[#allocation7 + $0x58] sm:$0xff]   ;;  %v2710_v59 = vld [vmem:[#allocation7 + $0x60] sm:$0xff]  }
 0x1c5   :  { %v1000_v5 = vpack.c.bf16 %v996_v60, %v996_v60  ;;  %v1002_v49 = vpack.c.bf16 %v998_v45, %v998_v45  ;;  %v2706_v57 = vld [vmem:[#allocation7 + $0x98] sm:$0xff]   ;;  %v2709_v60 = vld [vmem:[#allocation7 + $0xa0] sm:$0xff]   ;;  %v2713_v62 = vld [vmem:[#allocation7 + $0x68] sm:$0xff]  }
 0x1c6   :  { %v1001_v2 = vpack.c.bf16 %v997_v63, %v997_v63  ;;  %v1003_v11 = vpack.c.bf16 %v999_v1, %v999_v1  ;;  %v2708_v58 = vld [vmem:[#allocation7 + $0x18] sm:$0xff]   ;;  %v2711_v61 = vld [vmem:[#allocation7 + $0x20] sm:$0xff]   ;;  %v2712_v63 = vld [vmem:[#allocation7 + $0xa8] sm:$0xff]  }
 0x1c7   :  { %v2714_v1 = vld [vmem:[#allocation7 + $0x28] sm:$0xff]  }
 0x1c8   :  { %1661 = vmatprep.mubr.bf16.mxu0 %v1001_v2  ;;  %1743 = vmatprep.mubr.bf16.mxu1 %v1001_v2  ;;  %v2715_v2 = vld [vmem:[#allocation7 + $0xb0] sm:$0xff]  }
 0x1c9   :  { %1662 = vmatmul.mubr.bf16.vlgmr.msra.gmra.mrb[4].mxu0 %v1000_v5  ;;  %1744 = vmatmul.mubr.bf16.vlgmr.msra.gmra.mrb[4].mxu1 %v1000_v5  ;;  %v2718_v5 = vld [vmem:[#allocation7 + $0xb8] sm:$0xff]  }
 0x1ca   :  { %1671 = vmatpush1.bf16.msra.mxu0 %v2643_v3  ;;  %1753 = vmatpush1.bf16.msra.mxu1 %v2646_v4  ;;  %v2716_v3 = vld [vmem:[#allocation7 + $0x70] sm:$0xff]  }
 0x1cb   :  { %2310 = vmatprep.mubr.msk.bf16.mxu0 %vm828_vm0, %v1003_v11  ;;  %2311 = vmatprep.mubr.msk.bf16.mxu1 %vm828_vm0, %v1003_v11  ;;  %v2717_v4 = vld [vmem:[#allocation7 + $0x30] sm:$0xff]   ;;  %v2721_v11 = vld [vmem:[#allocation7 + $0xc0] sm:$0xff]  }
 0x1cc   :  { %1672 = vmatprep.subr.bf16.mxu0 %v2651_v6  ;;  %1754 = vmatprep.subr.bf16.mxu1 %v2654_v8  ;;  %v2719_v6 = vld [vmem:[#allocation7 + $0x78] sm:$0xff]  }
 0x1cd   :  { %v2720_v8 = vld [vmem:[#allocation7 + $0x38] sm:$0xff]  }
 0x1ce   :  { %1673 = vmatpush1.bf16.msra.mxu0 %v2649_v14  ;;  %1755 = vmatpush1.bf16.msra.mxu1 %v2652_v16  ;;  %v1104_v14 = vld [vmem:[%s3049_s6] sm:$0xf] }
 0x1cf   :  { %1674 = vmatprep.subr.bf16.mxu0 %v2657_v17  ;;  %1756 = vmatprep.subr.bf16.mxu1 %v2660_v7  ;;  %v1109_v16 = vrot.slane %v1104_v14, %v2929_v9  ;;  %v1117_v17 = vrot.slane %v1104_v14, %v2932_v10  ;;  %v1113_v7 = vrot.slane %v1104_v14, %v2936_v12 }
 0x1d2   :  { %1675 = vmatpush1.bf16.msra.mxu0 %v2655_v18  ;;  %1757 = vmatpush1.bf16.msra.mxu1 %v2658_v19  ;;  %v1121_v18 = vrot.slane %v1104_v14, %v2939_v13 }
 0x1d3   :  { %1676 = vmatprep.subr.bf16.mxu0 %v2663_v20  ;;  %1758 = vmatprep.subr.bf16.mxu1 %v2666_v21 }
 0x1d6   :  { %1677 = vmatpush1.bf16.msra.mxu0 %v2661_v24  ;;  %1759 = vmatpush1.bf16.msra.mxu1 %v2664_v15 }
 0x1d7   :  { %1678 = vmatprep.subr.bf16.mxu0 %v2669_v25  ;;  %1760 = vmatprep.subr.bf16.mxu1 %v2672_v26 }
 0x1da   :  { %1679 = vmatpush1.bf16.msra.mxu0 %v2667_v27  ;;  %1761 = vmatpush1.bf16.msra.mxu1 %v2670_v28 }
 0x1db   :  { %1680 = vmatprep.subr.bf16.mxu0 %v2675_v29  ;;  %1762 = vmatprep.subr.bf16.mxu1 %v2678_v30 }
 0x1de   :  { %1681 = vmatpush1.bf16.msra.mxu0 %v2673_v31  ;;  %1763 = vmatpush1.bf16.msra.mxu1 %v2676_v32 }
 0x1df   :  { %1682 = vmatprep.subr.bf16.mxu0 %v2681_v33  ;;  %1764 = vmatprep.subr.bf16.mxu1 %v2684_v34 }
 0x1e2   :  { %1683 = vmatpush1.bf16.msra.mxu0 %v2679_v35  ;;  %1765 = vmatpush1.bf16.msra.mxu1 %v2682_v23 }
 0x1e3   :  { %1684 = vmatprep.subr.bf16.mxu0 %v2687_v37  ;;  %1766 = vmatprep.subr.bf16.mxu1 %v2690_v38 }
 0x1e6   :  { %1685 = vmatpush1.bf16.msra.mxu0 %v2685_v22  ;;  %1767 = vmatpush1.bf16.msra.mxu1 %v2688_v39 }
 0x1e7   :  { %1686 = vmatprep.subr.bf16.mxu0 %v2693_v41  ;;  %1768 = vmatprep.subr.bf16.mxu1 %v2696_v42 }
 0x1ea   :  { %1687 = vmatpush1.bf16.msra.mxu0 %v2691_v43  ;;  %1769 = vmatpush1.bf16.msra.mxu1 %v2694_v44 }
 0x1eb   :  { %2051 = vmatprep.subr.bf16.mxu1 %v2823_v0  ;;  %2339 = vmatprep.subr.bf16.mxu0 %v2698_v46 }
 0x1ed   :  { %1703 = vmatmul.mubr.bf16.vlgmr.msra.gmra.mrb[4].mxu0 %v1002_v49  ;;  %1785 = vmatmul.mubr.bf16.vlgmr.msra.gmra.mrb[4].mxu1 %v1002_v49 }
 0x1ee   :  { %2052 = vmatpush1.bf16.msra.mxu1 %v2697_v47  ;;  %2340 = vmatpush3.bf16.msra.mxu0 %v2699_v48 }
 0x1ef   :  { %2053 = vmatprep.subr.bf16.mxu1 %v2823_v0  ;;  %2341 = vmatprep.subr.bf16.mxu0 %v2701_v50 }
 0x1f2   :  { %2054 = vmatpush1.bf16.msra.mxu1 %v2700_v51  ;;  %2342 = vmatpush3.bf16.msra.mxu0 %v2702_v52 }
 0x1f3   :  { %2055 = vmatprep.subr.bf16.mxu1 %v2823_v0  ;;  %2343 = vmatprep.subr.bf16.mxu0 %v2704_v53 }
 0x1f6   :  { %2056 = vmatpush1.bf16.msra.mxu1 %v2703_v54  ;;  %2344 = vmatpush3.bf16.msra.mxu0 %v2705_v55 }
 0x1f7   :  { %2057 = vmatprep.subr.bf16.mxu1 %v2823_v0  ;;  %2345 = vmatprep.subr.bf16.mxu0 %v2707_v56 }
 0x1fa   :  { %2058 = vmatpush1.bf16.msra.mxu1 %v2706_v57  ;;  %2346 = vmatpush3.bf16.msra.mxu0 %v2708_v58 }
 0x1fb   :  { %2059 = vmatprep.subr.bf16.mxu1 %v2823_v0  ;;  %2347 = vmatprep.subr.bf16.mxu0 %v2710_v59 }
 0x1fe   :  { %2060 = vmatpush1.bf16.msra.mxu1 %v2709_v60  ;;  %2348 = vmatpush3.bf16.msra.mxu0 %v2711_v61 }
 0x1ff   :  { %2061 = vmatprep.subr.bf16.mxu1 %v2823_v0  ;;  %2349 = vmatprep.subr.bf16.mxu0 %v2713_v62 }
 0x202   :  { %2062 = vmatpush1.bf16.msra.mxu1 %v2712_v63  ;;  %2350 = vmatpush3.bf16.msra.mxu0 %v2714_v1 }
 0x203   :  { %2063 = vmatprep.subr.bf16.mxu1 %v2823_v0  ;;  %2351 = vmatprep.subr.bf16.mxu0 %v2716_v3 }
 0x206   :  { %2064 = vmatpush1.bf16.msra.mxu1 %v2715_v2  ;;  %2352 = vmatpush3.bf16.msra.mxu0 %v2717_v4 }
 0x207   :  { %2065 = vmatprep.subr.bf16.mxu1 %v2823_v0  ;;  %2353 = vmatprep.subr.bf16.mxu0 %v2719_v6 }
 0x20a   :  { %2066 = vmatpush1.bf16.msra.mxu1 %v2718_v5  ;;  %2354 = vmatpush3.bf16.msra.mxu0 %v2720_v8 }
 0x20b   :  { %2067 = vmatprep.subr.bf16.mxu1 %v2823_v0 }
 0x20e   :  { %2068 = vmatpush1.bf16.msra.mxu1 %v2721_v11 }
 0x2c0   :  { %v1704_v19 = vpop.f32.mrb[4].mxu0  ;;  %v1786_v20 = vpop.f32.mrb[4].mxu1 }
 0x2c1   :  { %v2365_v0 = vadd.f32 %v1704_v19, %v1109_v16  ;;  %v2367_v21 = vadd.f32 %v1786_v20, %v1117_v17  ;;  %v1706_v24 = vpop.f32.mrb[5].mxu0  ;;  %v1788_v15 = vpop.f32.mrb[5].mxu1 }
 0x2c2   :  { %v2366_v25 = vadd.f32 %v1706_v24, %v1113_v7  ;;  %v2368_v26 = vadd.f32 %v1788_v15, %v1121_v18  ;;  %v1708_v27 = vpop.f32.mrb[6].mxu0  ;;  %v1790_v28 = vpop.f32.mrb[6].mxu1 }
 0x2c3   :  { %v1793_v29 = vmax.f32 %v2365_v0, 0.0  ;;  %v1795_v30 = vmax.f32 %v2367_v21, 0.0  ;;  %v1709_v31 = vpop.f32.mrb[7].mxu0  ;;  %v1791_v9 = vpop.f32.mrb[7].mxu1 }
 0x2c4   :  { %v1794_v32 = vmax.f32 %v2366_v25, 0.0  ;;  %v1796_v10 = vmax.f32 %v2368_v26, 0.0 }
 0x2c5   :  { %v1797_v34 = vpack.c.bf16 %v1793_v29, %v1793_v29  ;;  %v1799_v13 = vpack.c.bf16 %v1795_v30, %v1795_v30 }
 0x2c6   :  { %v1798_v33 = vpack.c.bf16 %v1794_v32, %v1794_v32  ;;  %v1800_v12 = vpack.c.bf16 %v1796_v10, %v1796_v10 }
 0x2c8   :  { %2043 = vmatprep.mubr.bf16.mxu0 %v1798_v33  ;;  %2338 = vmatprep.mubr.msk.bf16.mxu1 %vm828_vm0, %v1800_v12 }
 0x2c9   :  { %2044 = vmatmul.mubr.bf16.vlgmr.msra.gmra.mrb[8].mxu0 %v1797_v34  ;;  %2084 = vmatmul.mubr.bf16.vlgmr.msra.gmra.mrb[8].mxu1 %v1799_v13 }
 0x39c   :  { %v2355_v35 = vpop.f32.mrb[8].mxu0  ;;  %v2085_v23 = vpop.f32.mrb[8].mxu1 }
 0x39d   :  { %v2356_v37 = vpop.f32.mrb[9].mxu0  ;;  %v2087_v38 = vpop.f32.mrb[9].mxu1 }
 0x39e   :  { %v2357_v22 = vadd.f32 %v2356_v37, %v2355_v35  ;;  %v2358_v39 = vpop.f32.mrb[10].mxu0  ;;  %v2088_v40 = vpop.f32.mrb[10].mxu1 }
 0x39f   :  { %v2359_v41 = vpop.f32.mrb[11].mxu0  ;;  %v2089_v42 = vpop.f32.mrb[11].mxu1 }
 0x3a0   :  { %v2046_v43 = vadd.f32 %v2357_v22, %v2312_v36 }
 0x3a2   :  { %v2086_v44 = vadd.f32 %v2085_v23, %v2046_v43 }
 0x3a4   :  { %2091 = vst [vmem:[#allocation8] sm:$0xff] %v2086_v44 }
 0x3a5   :  { %2799 = shalt.err (!%p2796_p0)
}
 0x3a6   :  { %s2800_s15 = scalar_lea.hbm %s3052_s9, 128 }
 0x3a7   :  { %p2801_p1 = scmp.ne.s32.totalorder %s3052_s9, %s2800_s15  ;;  %p2804_p2 = scmp.lt.u32.totalorder %s2800_s15, %s3052_s9 }
 0x3a9   :  { %p2806_p3 = pnand %p2804_p2, %p2801_p1 }
 0x3ab   :  { %2809 = shalt.err (!%p2806_p3)
}
 0x3ac   :  { %2101 = dma.vmem_to_hbm [thread:$0]  %s2099_s5, 128, %s3052_s9, [#allocation4]  }
 0x3ad   :  { %2814 = dma.done.wait [#allocation4], 128  }
 0x3ae   :  { %2815 = vsyncadd [#allocation4], 4294967168 }
 0x3af   :  { %2105 = vsyncpa [#allocation3], 1 }
 0x3b0   :  { %2106 = vsyncpa [#allocation6], 1 }
 0x3b1   :  { %2107 = vsyncpa [#allocation4], 1 }

</bundles_post_ra>
